<compile_context>
chip_gen: v5e
topology: v5e:2x2
jax: 0.10.0
libtpu: 0.0.40
codegen_flags: <defaults>
</compile_context>

<pallas_src>
import jax
import jax.numpy as jnp
from jax.experimental import pallas as pl
from jax.experimental.pallas import tpu as pltpu


def mlp_kernel(x_ref, w1b1_ref, w2_ref, b2_ref, w3_ref, b3_ref, o_ref):
    act_dtype = w2_ref.dtype
    x = x_ref[...]                                              # (1, tb) f32

    # Bias-augmented input so layer 1 (mul + bias) runs on the MXU: (2, tb).
    x_aug = jnp.concatenate([x, jnp.ones_like(x)], axis=0).astype(act_dtype)

    # Layer 1 (+bias) on MXU: (64, 2) @ (2, tb) -> (64, tb); only ReLU on VPU.
    h1 = jnp.dot(w1b1_ref[...], x_aug, preferred_element_type=jnp.float32)
    h1 = jnp.maximum(h1, 0.0).astype(act_dtype)                 # (64, tb)

    # Layer 2 on MXU: (32, 64) @ (64, tb) -> (32, tb); bias + ReLU on VPU.
    h2 = jnp.dot(w2_ref[...], h1, preferred_element_type=jnp.float32)
    h2 = jnp.maximum(h2 + b2_ref[...], 0.0).astype(act_dtype)   # (32, tb)

    # Layer 3 on MXU: (1, 32) @ (32, tb) -> (1, tb); lane-dense output row.
    y = jnp.dot(w3_ref[...], h2, preferred_element_type=jnp.float32) + b3_ref[...]
    o_ref[...] = y.astype(o_ref.dtype)


def _round_up(n, m):
    return ((n + m - 1) // m) * m


def _act_dtype_for_device():
    # bf16 activations/weights on chips with bf16-native VPU/MXU (v6e, v7x);
    # keep f32 on v5e and older where bf16 casts would load the hot VALU slot.
    try:
        kind = jax.devices()[0].device_kind.lower()
    except Exception:
        return jnp.float32
    return jnp.bfloat16 if ("v6" in kind or "v7" in kind) else jnp.float32


def init_params(key):
    """PyTorch-layout Linear params with torch's default U(-1/sqrt(fan_in), ...) init."""
    ks = jax.random.split(key, 6)

    def lin(kw, kb, fan_in, fan_out):
        bound = 1.0 / jnp.sqrt(jnp.float32(fan_in))
        w = jax.random.uniform(kw, (fan_out, fan_in), jnp.float32, -bound, bound)
        b = jax.random.uniform(kb, (fan_out,), jnp.float32, -bound, bound)
        return w, b

    w1, b1 = lin(ks[0], ks[1], 1, 64)    # (64, 1), (64,)
    w2, b2 = lin(ks[2], ks[3], 64, 32)   # (32, 64), (32,)
    w3, b3 = lin(ks[4], ks[5], 32, 1)    # (1, 32), (1,)
    return {"w1": w1, "b1": b1, "w2": w2, "b2": b2, "w3": w3, "b3": b3}


def prepare_params(params, act_dtype):
    """Kernel-ready layout: bias-augmented w1, MXU weights in act_dtype, f32 biases."""
    w1b1 = jnp.concatenate([params["w1"], params["b1"][:, None]], axis=1)  # (64, 2)
    return {
        "w1b1": w1b1.astype(act_dtype),                       # (64, 2)
        "w2": params["w2"].astype(act_dtype),                 # (32, 64)
        "b2": params["b2"][:, None].astype(jnp.float32),      # (32, 1)
        "w3": params["w3"].astype(act_dtype),                 # (1, 32)
        "b3": params["b3"].reshape(1, 1).astype(jnp.float32), # (1, 1)
    }


def regression_model_forward(x, kp, *, max_tile_b=16384):
    """x: (B, 1) float32. kp: output of prepare_params."""
    B = x.shape[0]

    # Tile choice: large lane-dense tiles (multiple of 128) to amortize per-step
    # overhead, cdiv-balanced so a trailing tile is never almost empty, and
    # grid >= 2 when there is enough work so v7x's two TCs can both be used.
    min_grid = 2 if B >= 256 else 1
    grid_len = max(pl.cdiv(B, max_tile_b), min_grid)
    tile_b = _round_up(pl.cdiv(B, grid_len), 128)
    Bp = grid_len * tile_b

    x_row = x.reshape(B)
    if Bp == B:
        xt = x_row.reshape(1, Bp)                      # free reshape, no extra copy
    else:
        xt = jnp.pad(x_row, (0, Bp - B)).reshape(1, Bp)

    resident = lambda a: pl.BlockSpec(a.shape, lambda i: (0, 0))

    yt = pl.pallas_call(
        mlp_kernel,
        out_shape=jax.ShapeDtypeStruct((1, Bp), x.dtype),
        grid=(grid_len,),
        in_specs=[
            pl.BlockSpec((1, tile_b), lambda i: (0, i)),   # lane-dense x tile
            resident(kp["w1b1"]),
            resident(kp["w2"]),
            resident(kp["b2"]),
            resident(kp["w3"]),
            resident(kp["b3"]),
        ],
        out_specs=pl.BlockSpec((1, tile_b), lambda i: (0, i)),
        compiler_params=pltpu.CompilerParams(
            dimension_semantics=("parallel",),
            vmem_limit_bytes=32 * 1024 * 1024,
        ),
    )(xt, kp["w1b1"], kp["w2"], kp["b2"], kp["w3"], kp["b3"])

    if Bp == B:
        return yt.reshape(B, 1)
    return yt[0, :B].reshape(B, 1)


def reference_forward(x, p):
    h1 = jnp.maximum(x @ p["w1"].T + p["b1"], 0.0)   # (B, 64)
    h2 = jnp.maximum(h1 @ p["w2"].T + p["b2"], 0.0)  # (B, 32)
    return h2 @ p["w3"].T + p["b3"]                  # (B, 1)


if __name__ == "__main__":
    key = jax.random.PRNGKey(0)
    kp_key, kx = jax.random.split(key)
    params = init_params(kp_key)

    act_dtype = _act_dtype_for_device()
    kparams = prepare_params(params, act_dtype)

    # bf16 activations change numerics vs the f32 reference -> looser tolerance.
    tol = (dict(atol=1e-5, rtol=1e-5) if act_dtype == jnp.float32
           else dict(atol=5e-2, rtol=5e-2))

    B = 256  # two full 128-lane groups -> grid of 2 (exercises megacore sharding)
    x = jax.random.normal(kx, (B, 1), dtype=jnp.float32)
    out = jax.block_until_ready(regression_model_forward(x, kparams))
    ref = reference_forward(x, params)
    assert out.shape == (B, 1)
    assert jnp.allclose(out, ref, **tol), "mismatch vs reference (B=256)"

    # Non-multiple-of-128 batch exercises the padding path.
    x2 = jax.random.normal(jax.random.PRNGKey(1), (37, 1), dtype=jnp.float32)
    out2 = jax.block_until_ready(regression_model_forward(x2, kparams))
    assert jnp.allclose(out2, reference_forward(x2, params), **tol), "mismatch (B=37)"

    print("KERNEL_OK")
</pallas_src>

<mosaic_0001>
module attributes {stable_mosaic.version = 11 : i64} {
  func.func @mlp_kernel(%arg0: i32, %arg1: memref<1x128xf32, #tpu.memory_space<vmem>>, %arg2: memref<64x2xf32, #tpu.memory_space<vmem>>, %arg3: memref<32x64xf32, #tpu.memory_space<vmem>>, %arg4: memref<32x1xf32, #tpu.memory_space<vmem>>, %arg5: memref<1x32xf32, #tpu.memory_space<vmem>>, %arg6: memref<1x1xf32, #tpu.memory_space<vmem>>, %arg7: memref<1x128xf32, #tpu.memory_space<vmem>>) attributes {dimension_semantics = [#tpu.dimension_semantics<parallel>], iteration_bounds = array<i64: 2>, scalar_prefetch = 0 : i64, scratch_operands = 0 : i64, tpu.core_type = #tpu.core_type<tc>, window_params = [{transform_indices = @transform_0, window_bounds = array<i64: 1, 128>}, {pipeline_mode = #tpu.pipeline_mode<synchronous>, transform_indices = @transform_1, window_bounds = array<i64: 64, 2>}, {pipeline_mode = #tpu.pipeline_mode<synchronous>, transform_indices = @transform_2, window_bounds = array<i64: 32, 64>}, {pipeline_mode = #tpu.pipeline_mode<synchronous>, transform_indices = @transform_3, window_bounds = array<i64: 32, 1>}, {pipeline_mode = #tpu.pipeline_mode<synchronous>, transform_indices = @transform_4, window_bounds = array<i64: 1, 32>}, {pipeline_mode = #tpu.pipeline_mode<synchronous>, transform_indices = @transform_5, window_bounds = array<i64: 1, 1>}, {transform_indices = @transform_6, window_bounds = array<i64: 1, 128>}]} {
    %c0 = arith.constant 0 : index
    %c0_0 = arith.constant 0 : index
    %0 = vector.load %arg1[%c0, %c0_0] : memref<1x128xf32, #tpu.memory_space<vmem>>, vector<1x128xf32>
    %cst = arith.constant 1.000000e+00 : f32
    %1 = vector.broadcast %cst : f32 to vector<1x128xf32>
    %2 = tpu.concatenate %0, %1 in 0 : vector<1x128xf32>, vector<1x128xf32> -> vector<2x128xf32>
    %c0_1 = arith.constant 0 : index
    %c0_2 = arith.constant 0 : index
    %3 = vector.load %arg2[%c0_1, %c0_2] : memref<64x2xf32, #tpu.memory_space<vmem>>, vector<64x2xf32>
    %cst_3 = arith.constant dense<0.000000e+00> : vector<64x128xf32>
    %4 = tpu.matmul %3, %2, %cst_3 {dimension_numbers = #tpu.dot_dimension_numbers<[1], [0], [0], [1], [0, 0, 1, 1], [], []>} : vector<64x2xf32>, vector<2x128xf32>, vector<64x128xf32> -> vector<64x128xf32>
    %cst_4 = arith.constant 0.000000e+00 : f32
    %5 = vector.broadcast %cst_4 : f32 to vector<64x128xf32>
    %6 = arith.maximumf %4, %5 : vector<64x128xf32>
    %c0_5 = arith.constant 0 : index
    %c0_6 = arith.constant 0 : index
    %7 = vector.load %arg3[%c0_5, %c0_6] : memref<32x64xf32, #tpu.memory_space<vmem>>, vector<32x64xf32>
    %cst_7 = arith.constant dense<0.000000e+00> : vector<32x128xf32>
    %8 = tpu.matmul %7, %6, %cst_7 {dimension_numbers = #tpu.dot_dimension_numbers<[1], [0], [0], [1], [0, 0, 1, 1], [], []>} : vector<32x64xf32>, vector<64x128xf32>, vector<32x128xf32> -> vector<32x128xf32>
    %c0_8 = arith.constant 0 : index
    %c0_9 = arith.constant 0 : index
    %9 = vector.load %arg4[%c0_8, %c0_9] : memref<32x1xf32, #tpu.memory_space<vmem>>, vector<32x1xf32>
    %10 = vector.broadcast %9 : vector<32x1xf32> to vector<32x128xf32>
    %11 = arith.addf %8, %10 : vector<32x128xf32>
    %cst_10 = arith.constant 0.000000e+00 : f32
    %12 = vector.broadcast %cst_10 : f32 to vector<32x128xf32>
    %13 = arith.maximumf %11, %12 : vector<32x128xf32>
    %c0_11 = arith.constant 0 : index
    %c0_12 = arith.constant 0 : index
    %14 = vector.load %arg5[%c0_11, %c0_12] : memref<1x32xf32, #tpu.memory_space<vmem>>, vector<1x32xf32>
    %cst_13 = arith.constant dense<0.000000e+00> : vector<1x128xf32>
    %15 = tpu.matmul %14, %13, %cst_13 {dimension_numbers = #tpu.dot_dimension_numbers<[1], [0], [0], [1], [0, 0, 1, 1], [], []>} : vector<1x32xf32>, vector<32x128xf32>, vector<1x128xf32> -> vector<1x128xf32>
    %c0_14 = arith.constant 0 : index
    %c0_15 = arith.constant 0 : index
    %16 = vector.load %arg6[%c0_14, %c0_15] : memref<1x1xf32, #tpu.memory_space<vmem>>, vector<1x1xf32>
    %17 = vector.broadcast %16 : vector<1x1xf32> to vector<1x128xf32>
    %18 = arith.addf %15, %17 : vector<1x128xf32>
    %c0_16 = arith.constant 0 : index
    %c0_17 = arith.constant 0 : index
    %19 = vector.load %arg7[%c0_16, %c0_17] : memref<1x128xf32, #tpu.memory_space<vmem>>, vector<1x128xf32>
    tpu.vector_store %arg7[%c0_16, %c0_17], %18 {strides = array<i32>} : memref<1x128xf32, #tpu.memory_space<vmem>>, vector<1x128xf32>,
    return
  }
  func.func @transform_0(%arg0: i32) -> (i32, i32) {
    %c0_i32 = arith.constant 0 : i32
    %c0_i32_0 = arith.constant 0 : i32
    return %c0_i32, %arg0 : i32, i32
  }
  func.func @transform_1(%arg0: i32) -> (i32, i32) {
    %c0_i32 = arith.constant 0 : i32
    %c0_i32_0 = arith.constant 0 : i32
    %c0_i32_1 = arith.constant 0 : i32
    return %c0_i32, %c0_i32_0 : i32, i32
  }
  func.func @transform_2(%arg0: i32) -> (i32, i32) {
    %c0_i32 = arith.constant 0 : i32
    %c0_i32_0 = arith.constant 0 : i32
    %c0_i32_1 = arith.constant 0 : i32
    return %c0_i32, %c0_i32_0 : i32, i32
  }
  func.func @transform_3(%arg0: i32) -> (i32, i32) {
    %c0_i32 = arith.constant 0 : i32
    %c0_i32_0 = arith.constant 0 : i32
    %c0_i32_1 = arith.constant 0 : i32
    return %c0_i32, %c0_i32_0 : i32, i32
  }
  func.func @transform_4(%arg0: i32) -> (i32, i32) {
    %c0_i32 = arith.constant 0 : i32
    %c0_i32_0 = arith.constant 0 : i32
    %c0_i32_1 = arith.constant 0 : i32
    return %c0_i32, %c0_i32_0 : i32, i32
  }
  func.func @transform_5(%arg0: i32) -> (i32, i32) {
    %c0_i32 = arith.constant 0 : i32
    %c0_i32_0 = arith.constant 0 : i32
    %c0_i32_1 = arith.constant 0 : i32
    return %c0_i32, %c0_i32_0 : i32, i32
  }
  func.func @transform_6(%arg0: i32) -> (i32, i32) {
    %c0_i32 = arith.constant 0 : i32
    %c0_i32_0 = arith.constant 0 : i32
    return %c0_i32, %arg0 : i32, i32
  }
}

</mosaic_0001>

<bundles_post_ra>
// kernel: tpu_custom_call.1
= control target key start
LH: loop header
LB: loop body
LE: loop exit
PB: predicated region body
PF: predicated region fallthrough
CT: control target
= control target key end

     0   :  { %s825_s0 = inlined_call_operand.vmem [shape: f32[1,256], index: 0, kind: input, shape index: {}]   ;;  %s826_s1 = inlined_call_operand.vmem [shape: f32[64,2], index: 1, kind: input, shape index: {}]   ;;  %s827_s2 = inlined_call_operand.vmem [shape: f32[32,64], index: 2, kind: input, shape index: {}]   ;;  %s828_s3 = inlined_call_operand.vmem [shape: f32[32,1], index: 3, kind: input, shape index: {}]   ;;  %s829_s4 = inlined_call_operand.vmem [shape: f32[1,32], index: 4, kind: input, shape index: {}]   ;;  %s830_s5 = inlined_call_operand.<no memory space> [shape: f32[1,1], index: 5, kind: input, shape index: {}]   ;;  %s831_s6 = inlined_call_operand.hbm [shape: f32[1,256], index: 6, kind: output, shape index: {}]  }
   0x1   :  { %v11_v0 = vstv %s830_s5 }
   0x2   :  { %12 = vst [vmem:[#allocation2] sm:$0x1] %v11_v0 }
   0x3   :  { %13 = vsyncpa [#allocation4], 0 }
   0x4   :  { %15 = vsyncpa [#allocation4 + $0x1], 0  ;;  %s681_s23 = smov 0   ;;  %s683_s24 = smov 0  }
   0x5   :  { %s685_s25 = smov 0   ;;  %s687_s26 = smov 0  }
   0x6 LB: > { %s702_s5 = sadd.s32 4294967295, %s640_s26   ;;  %s506_s27 = sadd.s32 4294967294, %s640_s26   ;;  %s640_s26 = sphi %s687_s26, %s837_s26   ;;  %s636_s25 = sphi %s685_s25, %s836_s25   ;;  %s632_s24 = sphi %s683_s24, %s835_s24   ;;  %s628_s23 = sphi %s681_s23, %s834_s23  }
   0x7   : > { %s706_s28 = sadd.s32 1, %s640_s26   ;;  %s159_s29 = sadd.s32 1, %s636_s25 }
   0x8   : > { %s156_s30 = ssub.s32 %s640_s26, %s706_s28  ;;  %p169_p0 = scmp.ne.s32.totalorder %s636_s25, %s632_s24 }
   0x9   : > { %p157_p1 = scmp.eq.s32.totalorder %s156_s30, 0  ;;  %p170_p2 = scmp.eq.s32.totalorder %s702_s5, 1 }
   0xa   : > { %p175_p3 = scmp.ne.s32.totalorder %s632_s24, %s628_s23  ;;  %p176_p4 = scmp.eq.s32.totalorder %s506_s27, 1 }
   0xb   : > { %s717_s7 = scalar_select %p157_p1, %s636_s25, %s159_s29  }
   0xc   : > { %p719_p5 = por %p170_p2, %p169_p0  ;;  %p723_p6 = por %p176_p4, %p175_p3 }
   0xd   : > { %p509_p7 = scmp.ge.s32.totalorder %s640_s26, 1  ;;  %p215_p8 = scmp.lt.s32.totalorder %s640_s26, 3 }
   0xf   : > { %p216_p9 = pnand %p509_p7, %p215_p8 }
  0x10   : > { %p242_p10 = scmp.lt.s32.totalorder (!%p216_p9), %s702_s5, 1  ;;  %s240_s16 = sand.u32 (!%p216_p9), 1, %s632_s24  }
  0x11   : > { %219 = sbr.rel (%p216_p9) target bundleno = 489 (0x1e9), region = 44  ;;  %s450_s19 = scalar_lea.hbm (!%p216_p9), %s831_s6, %s702_s5 }
  0x12   : > { %s241_s20 = scalar_lea.vmem (!%p216_p9), [#allocation3], %s240_s16  ;;  %s454_s22 = sshll.u32 (!%p216_p9), %s450_s19, 4  ;;  %s455_s22 = int_to_ptr.hbm [resolvable:$true] %s454_s22 }
  0x13   : > { %s452_s21 = sshll.u32 (!%p216_p9), %s241_s20, 4  ;;  %s442_s27 = scalar_lea.sflag (!%p216_p9), [#allocation4], %s240_s16  ;;  %s453_s21 = int_to_ptr.vmem [resolvable:$true] %s452_s21 }
  0x14   : > { %s592_s29 = sshra.s32 (!%p216_p9), %s455_s22, 4  ;;  %s593_s29 = int_to_ptr.hbm [resolvable:$true] %s592_s29 }
  0x15   : > { %s594_s30 = scalar_lea.hbm (!%p216_p9), %s593_s29, 1  ;;  %p599_p0 = scmp.lt.s32.totalorder (!%p216_p9), %s593_s29, %s831_s6 }
  0x16   : > { %s243_s10 = scalar_select %p242_p10, %s702_s5, 1  ;;  %vm246_vm0 = vcmask 1040384   ;;  %vm281_vm1 = vcmask 1041408   ;;  %v252_v2 = vld [vmem:[%s826_s1 + $0x20] sm:$0xff]  ;;  %vm256_vm2 = vcmask 15360   ;;  %v253_v5 = vld [vmem:[%s826_s1 + $0x28] sm:$0xff] }
  0x17   : > { %v248_v3 = vld [vmem:[%s826_s1] sm:$0xff]  ;;  %v249_v6 = vld [vmem:[%s826_s1 + $0x8] sm:$0xff]  ;;  %v254_v7 = vld [vmem:[%s826_s1 + $0x30] sm:$0xff]  ;;  %v642_v16 = vmov 0   ;;  %vm362_vm3 = vcmask 523264   ;;  %vm416_vm4 = vcmask 261120   ;;  %p595_p11 = scmp.ne.s32.totalorder %s593_s29, %s594_s30 }
  0x18   : > { %s244_s13 = scalar_lea.vmem %s825_s0, %s243_s10  ;;  %v250_v8 = vld [vmem:[%s826_s1 + $0x10] sm:$0xff]  ;;  %v255_v9 = vld [vmem:[%s826_s1 + $0x38] sm:$0xff]  ;;  %v339_v15 = vld [vmem:[%s828_s3 + $0x8] sm:$0xff]  ;;  %576 = vset.pattern.permute.xlu1 %v642_v16  ;;  %575 = vset.pattern.permute.xlu0 %v642_v16  ;;  %s598_s5 = scalar_lea.hbm %s831_s6, 2 }
  0x19   : > { %v245_v1 = vld [vmem:[%s244_s13] sm:$0x1]  ;;  %v251_v10 = vld [vmem:[%s826_s1 + $0x18] sm:$0xff]  ;;  %349 = vperm.xlu1 %576, %v339_v15   ;;  %577 = vset.pattern.permute.xlu2 %v642_v16  ;;  %v340_v23 = vld [vmem:[%s828_s3 + $0x10] sm:$0xff]  ;;  %p596_p12 = pnand %p595_p11, %p719_p5  ;;  %p600_p1 = scmp.lt.s32.totalorder %s598_s5, %s594_s30 }
  0x1a   : > { %v247_v4 = vsel %vm246_vm0, %v245_v1, 1.0  ;;  %v341_v19 = vld [vmem:[%s828_s3 + $0x18] sm:$0xff]  ;;  %v338_v20 = vld [vmem:[%s828_s3] sm:$0xff]  ;;  %v335_v34 = vld [vmem:[%s827_s2 + $0x8] sm:$0xff] }
  0x1b   : > { %526 = vmatpush.msk.msra.mxu3 %vm281_vm1, %v247_v4  ;;  %510 = vmatpush.msk.msra.mxu0 %vm281_vm1, %v247_v4  ;;  %v334_v32 = vld [vmem:[%s827_s2] sm:$0xff]  ;;  %v337_v33 = vld [vmem:[%s827_s2 + $0x18] sm:$0xff]  ;;  %v336_v35 = vld [vmem:[%s827_s2 + $0x10] sm:$0xff]  ;;  %p597_p13 = pneg %p596_p12  ;;  %p601_p2 = por %p600_p1, %p599_p0 }
  0x1c   : > { %515 = vmatmul.msk.f32.vlgmr.msra.gmra.mxu3 %vm256_vm2, %v252_v2  ;;  %511 = vmatmul.msk.f32.vlgmr.msra.gmra.mxu0 %vm256_vm2, %v248_v3  ;;  %v409_v36 = vld [vmem:[#allocation2] sm:$0x1] }
  0x1d   : > { %359 = vperm.xlu0 %575, %v341_v19   ;;  %412 = vperm.xlu2 %577, %v409_v36   ;;  %v408_v53 = vld [vmem:[%s829_s4] sm:$0x1]  ;;  %p602_p3 = pnand %p601_p2, %p597_p13 }
  0x21   : > { %344 = vperm.xlu1 %576, %v338_v20  }
  0x24   : > { %516 = vmatmul.msk.f32.gmra.mxu3 %vm256_vm2, %v253_v5  ;;  %512 = vmatmul.msk.f32.gmra.mxu0 %vm256_vm2, %v249_v6 }
  0x25   : > { %354 = vperm.xlu0 %575, %v340_v23  }
  0x2c   : > { %517 = vmatmul.msk.f32.gmra.mxu3 %vm256_vm2, %v254_v7  ;;  %513 = vmatmul.msk.f32.gmra.mxu0 %vm256_vm2, %v250_v8 }
  0x34   : > { %518 = vmatmul.msk.f32.gmra.mxu3 %vm256_vm2, %v255_v9  ;;  %514 = vmatmul.msk.f32.gmra.mxu0 %vm256_vm2, %v251_v10 }
  0x77   : > { %v413_v54 = vpop.permute.xlu2 %412 }
  0x78   : > { %v415_v55 = vperm.slane %v413_v54, 0 }
  0x8b   : > { %v350_v38 = vpop.permute.xlu1 %349 }
  0x8f   : > { %v360_v39 = vpop.permute.xlu0 %359 }
  0x93   : > { %v345_v44 = vpop.permute.xlu1 %344 }
  0x97   : > { %v355_v45 = vpop.permute.xlu0 %354 }
  0x99   : > { %v302_v11 = vpop.f32.mrf.mxu0 }
  0x9a   : > { %v326_v31 = vmax.f32 %v302_v11, 0.0 }
  0x9f   : > { %v314_v12 = vpop.f32.mrf.mxu3 }
  0xa0   : > { %v330_v27 = vmax.f32 %v314_v12, 0.0 }
  0xa1   : > { %v305_v14 = vpop.f32.mrf.mxu0 }
  0xa2   : > { %v327_v30 = vmax.f32 %v305_v14, 0.0 }
  0xa7   : > { %v317_v13 = vpop.f32.mrf.mxu3 }
  0xa8   : > { %v331_v26 = vmax.f32 %v317_v13, 0.0 }
  0xa9   : > { %v308_v18 = vpop.f32.mrf.mxu0 }
  0xaa   : > { %v328_v29 = vmax.f32 %v308_v18, 0.0 }
  0xaf   : > { %v320_v17 = vpop.f32.mrf.mxu3 }
  0xb0   : > { %v332_v24 = vmax.f32 %v320_v17, 0.0 }
  0xb1   : > { %v311_v25 = vpop.f32.mrf.mxu0 }
  0xb2   : > { %v329_v28 = vmax.f32 %v311_v25, 0.0 }
  0xb7   : > { %v323_v21 = vpop.f32.mrf.mxu3 }
  0xb8   : > { %v333_v22 = vmax.f32 %v323_v21, 0.0 }
  0xba   : > { %383 = vmatpush.msra.mxu1 %v333_v22  ;;  %527 = vmatpush.msra.mxu2 %v333_v22 }
  0xbc   : > { %384 = vmatpush.msra.mxu1 %v332_v24  ;;  %528 = vmatpush.msra.mxu2 %v332_v24 }
  0xbe   : > { %385 = vmatpush.msra.mxu1 %v331_v26  ;;  %529 = vmatpush.msra.mxu2 %v331_v26 }
  0xc0   : > { %386 = vmatpush.msra.mxu1 %v330_v27  ;;  %530 = vmatpush.msra.mxu2 %v330_v27 }
  0xc2   : > { %387 = vmatpush.msra.mxu1 %v329_v28  ;;  %531 = vmatpush.msra.mxu2 %v329_v28 }
  0xc4   : > { %388 = vmatpush.msra.mxu1 %v328_v29  ;;  %532 = vmatpush.msra.mxu2 %v328_v29 }
  0xc6   : > { %389 = vmatpush.msra.mxu1 %v327_v30  ;;  %533 = vmatpush.msra.mxu2 %v327_v30 }
  0xc8   : > { %390 = vmatpush.msra.mxu1 %v326_v31  ;;  %534 = vmatpush.msra.mxu2 %v326_v31 }
  0xc9   : > { %519 = vmatmul.msk.f32.vlgmr.msra.gmra.mxu1 %vm362_vm3, %v334_v32  ;;  %522 = vmatmul.msk.f32.vlgmr.msra.gmra.mxu2 %vm362_vm3, %v337_v33 }
  0xd1   : > { %520 = vmatmul.msk.f32.gmra.mxu1 %vm362_vm3, %v335_v34 }
  0xd9   : > { %521 = vmatmul.msk.f32.gmra.mxu1 %vm362_vm3, %v336_v35 }
 0x146   : > { %v392_v37 = vpop.f32.mrf.mxu1 }
 0x147   : > { %v393_v49 = vadd.f32 %v392_v37, %v345_v44 }
 0x149   : > { %v404_v52 = vmax.f32 %v393_v49, 0.0 }
 0x14c   : > { %v401_v40 = vpop.f32.mrf.mxu2 }
 0x14d   : > { %v402_v41 = vadd.f32 %v401_v40, %v360_v39 }
 0x14e   : > { %v395_v42 = vpop.f32.mrf.mxu1 }
 0x14f   : > { %v407_v43 = vmax.f32 %v402_v41, 0.0  ;;  %v396_v47 = vadd.f32 %v395_v42, %v350_v38 }
 0x151   : > { %432 = vmatpush.msrb.mxu2 %v407_v43  ;;  %v405_v51 = vmax.f32 %v396_v47, 0.0 }
 0x156   : > { %v398_v46 = vpop.f32.mrf.mxu1 }
 0x157   : > { %v399_v48 = vadd.f32 %v398_v46, %v355_v45 }
 0x159   : > { %v406_v50 = vmax.f32 %v399_v48, 0.0 }
 0x15b   : > { %433 = vmatpush.msrb.mxu2 %v406_v50 }
 0x15d   : > { %434 = vmatpush.msrb.mxu2 %v405_v51 }
 0x15f   : > { %435 = vmatpush.msrb.mxu2 %v404_v52 }
 0x160   : > { %523 = vmatmul.msk.f32.vlgmr.msrb.gmra.mxu2 %vm416_vm4, %v408_v53 }
 0x1e3   : > { %v437_v56 = vpop.f32.mrf.mxu2 }
 0x1e4   : > { %v438_v57 = vadd.f32 %v437_v56, %v415_v55 }
 0x1e6   : > { %440 = vst [vmem:[%s241_s20] sm:$0x1] %v438_v57 }
 0x1e7   : > { %605 = shalt.err (!%p602_p3)
}
 0x1e8   : > { %535 = dma.vmem_to_hbm [thread:$0]  (%p719_p5), %s453_s21, 16, %s455_s22, %s442_s27  }
 0x1e9 PF: > { %p541_p4 = scmp.ge.s32.totalorder %s640_s26, 2  ;;  %s466_s14 = sand.u32 1, %s628_s23  }
 0x1ea   : > { %s467_s15 = scalar_lea.sflag [#allocation4], %s466_s14 }
 0x1eb   : > { %p538_p7 = pnand %p541_p4, %p723_p6 }
 0x1ed   : > { %p539_p8 = pneg %p538_p7 }
 0x1ef   : > { %623 = dma.done.wait (%p539_p8), %s467_s15, 16  }
 0x1f0   : > { %625 = vsyncadd (%p539_p8), %s467_s15, 4294967280  ;;  %p18_p9 = scmp.ge.s32.totalorder %s706_s28, 4   ;;  %s834_s23 = smov %s632_s24 }
 0x1f1   : > { %s835_s24 = smov %s636_s25  ;;  %s836_s25 = smov %s717_s7 }
 0x1f2   : > { %s837_s26 = smov %s706_s28  ;;  %20 = sbr.rel (!%p18_p9) target bundleno = 6 (0x6), region = 79 }
 0x1f7   :  { %472 = vsyncpa [#allocation4], 1 }
 0x1f8   :  { %474 = vsyncpa [#allocation4 + $0x1], 1 }

</bundles_post_ra>
